<compile_context>
chip_gen: v5e
topology: v5e:2x2
jax: 0.10.0
libtpu: 0.0.40
codegen_flags: <defaults>
</compile_context>

<pallas_src>
import functools

import jax
import jax.numpy as jnp
import numpy as np
from jax.experimental import pallas as pl
from jax.experimental.pallas import tpu as pltpu


def _pick_q_tile(lq, candidates=(512, 256, 128)):
    """Largest lane/sublane-friendly tile that divides Lq, else the full Lq."""
    for t in candidates:
        if lq % t == 0:
            return t
    return lq


def _mha_kernel(q_ref, k_ref, v_ref, wq_ref, wk_ref, wv_ref, wfc_ref,
                out_ref, attn_ref,
                kp_ref, vp_ref, hv_ref,
                *, n_head, d_k, d_v):
    """One grid step = one (batch element, q tile); all heads handled inside."""
    qi = pl.program_id(1)

    # --- K/V projections: q-tile invariant, computed once per batch element.
    # The qi grid axis is "arbitrary" (in-order on one core), so scratch written
    # at qi == 0 is valid for all subsequent q tiles of this batch element.
    @pl.when(qi == 0)
    def _():
        kp_ref[...] = jnp.dot(k_ref[0], wk_ref[...],
                              preferred_element_type=jnp.float32
                              ).astype(jnp.bfloat16)          # (Lk, H*d_k)
        vp_ref[...] = jnp.dot(v_ref[0], wv_ref[...],
                              preferred_element_type=jnp.float32
                              ).astype(jnp.bfloat16)          # (Lk, H*d_v)

    # --- Q projection for this tile: one lane-dense MXU matmul over all heads.
    qp = jnp.dot(q_ref[0], wq_ref[...],
                 preferred_element_type=jnp.float32
                 ).astype(jnp.bfloat16)                       # (TQ, H*d_k)

    # --- Per-head attention (static unroll; slices are static, columns of the
    # lane-dense projection slabs / scratch).
    for h in range(n_head):
        qh = qp[:, h * d_k:(h + 1) * d_k]                     # (TQ, d_k)
        kh = kp_ref[:, h * d_k:(h + 1) * d_k]                 # (Lk, d_k)
        vh = vp_ref[:, h * d_v:(h + 1) * d_v]                 # (Lk, d_v)

        # Scores: contract last dims directly (no materialized K transpose).
        s = jax.lax.dot_general(qh, kh, (((1,), (1,)), ((), ())),
                                preferred_element_type=jnp.float32)  # (TQ, Lk)

        # Numerically stable softmax in f32 (no 1/sqrt(d_k), matching the ref).
        s = s - jnp.max(s, axis=-1, keepdims=True)
        e = jnp.exp(s)
        # Exact reciprocal: attn is user-visible, rows must sum to 1.
        p = e * pl.reciprocal(jnp.sum(e, axis=-1, keepdims=True), approx=False)

        attn_ref[0, h] = p.astype(attn_ref.dtype)

        # PV result -> lane slice of the head-output scratch slab.
        hv_ref[:, h * d_v:(h + 1) * d_v] = jnp.dot(
            p.astype(jnp.bfloat16), vh,
            preferred_element_type=jnp.float32).astype(jnp.bfloat16)

    # --- Single output projection from the lane-dense head slab.
    out_ref[0] = jnp.dot(hv_ref[...], wfc_ref[...],
                         preferred_element_type=jnp.float32).astype(out_ref.dtype)


def multi_head_attention(q, k, v, w_qs, w_ks, w_vs, w_fc, n_head, d_k, d_v,
                         *, q_tile=None,
                         attn_dtype=jnp.bfloat16,
                         out_dtype=jnp.float32):
    """q, k, v: (B, L, d_model) arrays.  Weights in PyTorch nn.Linear layout:
       w_qs/w_ks: (n_head*d_k, d_model), w_vs: (n_head*d_v, d_model),
       w_fc: (d_model, n_head*d_v).  Returns (out, attn)."""
    B, Lq, d_model = q.shape
    Lk = k.shape[1]

    if q_tile is None:
        q_tile = _pick_q_tile(Lq)
    assert Lq % q_tile == 0, "q_tile must divide Lq"
    nq = Lq // q_tile

    # bf16 MXU operands: cast inputs in the wrapper (halves DMA + input VMEM).
    qb = q.astype(jnp.bfloat16)
    kb = k.astype(jnp.bfloat16)
    vb = v.astype(jnp.bfloat16)

    # nn.Linear computes x @ W^T: pre-transpose once to lane-dense layouts.
    # Head h then occupies columns [h*d_k:(h+1)*d_k] (resp. d_v), matching
    # .view(B, L, H, d).transpose(1, 2) of the PyTorch reference.
    wq = jnp.transpose(w_qs).astype(jnp.bfloat16)   # (d_model, H*d_k)
    wk = jnp.transpose(w_ks).astype(jnp.bfloat16)   # (d_model, H*d_k)
    wv = jnp.transpose(w_vs).astype(jnp.bfloat16)   # (d_model, H*d_v)
    wfc = jnp.transpose(w_fc).astype(jnp.bfloat16)  # (H*d_v, d_model)

    kernel = functools.partial(_mha_kernel, n_head=n_head, d_k=d_k, d_v=d_v)

    out, attn = pl.pallas_call(
        kernel,
        out_shape=(
            jax.ShapeDtypeStruct((B, Lq, d_model), out_dtype),
            jax.ShapeDtypeStruct((B, n_head, Lq, Lk), attn_dtype),
        ),
        grid_spec=pltpu.PrefetchScalarGridSpec(
            num_scalar_prefetch=0,
            grid=(B, nq),
            in_specs=[
                pl.BlockSpec((1, q_tile, d_model), lambda b, i: (b, i, 0)),  # q
                pl.BlockSpec((1, Lk, d_model), lambda b, i: (b, 0, 0)),      # k
                pl.BlockSpec((1, Lk, d_model), lambda b, i: (b, 0, 0)),      # v
                # Weights: constant index_map -> DMA'd once, resident in VMEM.
                pl.BlockSpec((d_model, n_head * d_k), lambda b, i: (0, 0)),  # Wq^T
                pl.BlockSpec((d_model, n_head * d_k), lambda b, i: (0, 0)),  # Wk^T
                pl.BlockSpec((d_model, n_head * d_v), lambda b, i: (0, 0)),  # Wv^T
                pl.BlockSpec((n_head * d_v, d_model), lambda b, i: (0, 0)),  # Wfc^T
            ],
            out_specs=(
                pl.BlockSpec((1, q_tile, d_model), lambda b, i: (b, i, 0)),        # out
                pl.BlockSpec((1, n_head, q_tile, Lk), lambda b, i: (b, 0, i, 0)),  # attn
            ),
            scratch_shapes=[
                pltpu.VMEM((Lk, n_head * d_k), jnp.bfloat16),     # K' cache
                pltpu.VMEM((Lk, n_head * d_v), jnp.bfloat16),     # V' cache
                pltpu.VMEM((q_tile, n_head * d_v), jnp.bfloat16), # head-out slab
            ],
        ),
        compiler_params=pltpu.CompilerParams(
            # B parallel (megacore sharding); qi "arbitrary" so the K'/V'
            # scratch cache written at qi == 0 is reused across q tiles.
            dimension_semantics=("parallel", "arbitrary"),
            # Above every default scoped limit, below v7x's 64 MiB physical.
            vmem_limit_bytes=48 * 1024 * 1024,
        ),
    )(qb, kb, vb, wq, wk, wv, wfc)

    return out, attn


def _reference(q, k, v, w_qs, w_ks, w_vs, w_fc, n_head, d_k, d_v):
    B, Lq, d_model = q.shape
    Lk = k.shape[1]
    Q = (q @ w_qs.T).reshape(B, Lq, n_head, d_k).transpose(0, 2, 1, 3)
    K = (k @ w_ks.T).reshape(B, Lk, n_head, d_k).transpose(0, 2, 1, 3)
    V = (v @ w_vs.T).reshape(B, Lk, n_head, d_v).transpose(0, 2, 1, 3)
    s = jnp.einsum("bhqd,bhkd->bhqk", Q, K)
    attn = jax.nn.softmax(s, axis=-1)
    o = jnp.einsum("bhqk,bhkd->bhqd", attn, V)
    o = o.transpose(0, 2, 1, 3).reshape(B, Lq, n_head * d_v)
    out = o @ w_fc.T
    return out, attn


if __name__ == "__main__":
    # Small shapes consistent with the module's forward.  NOTE: these toy
    # blocks are below (8, 128), so they are NOT representative of perf;
    # validate performance with L a multiple of 128 and d_model >= 128.
    B, Lq, Lk = 2, 8, 8
    d_model, n_head, d_k, d_v = 32, 4, 8, 8

    key = jax.random.PRNGKey(0)
    kq, kk, kv, kwq, kwk, kwv, kwf = jax.random.split(key, 7)

    q = jax.random.normal(kq, (B, Lq, d_model), dtype=jnp.float32)
    k = jax.random.normal(kk, (B, Lk, d_model), dtype=jnp.float32)
    v = jax.random.normal(kv, (B, Lk, d_model), dtype=jnp.float32)

    # Deterministic synthetic parameters (nn.Linear weight shapes, no bias).
    w_qs = 0.1 * jax.random.normal(kwq, (n_head * d_k, d_model), dtype=jnp.float32)
    w_ks = 0.1 * jax.random.normal(kwk, (n_head * d_k, d_model), dtype=jnp.float32)
    w_vs = 0.1 * jax.random.normal(kwv, (n_head * d_v, d_model), dtype=jnp.float32)
    w_fc = 0.1 * jax.random.normal(kwf, (d_model, n_head * d_v), dtype=jnp.float32)

    out, attn = multi_head_attention(q, k, v, w_qs, w_ks, w_vs, w_fc,
                                     n_head, d_k, d_v)
    jax.block_until_ready((out, attn))

    ref_out, ref_attn = _reference(q, k, v, w_qs, w_ks, w_vs, w_fc,
                                   n_head, d_k, d_v)
    assert out.shape == (B, Lq, d_model)
    assert attn.shape == (B, n_head, Lq, Lk)
    # bf16 MXU operands / bf16 attn output (f32 accumulation) -> looser
    # tolerances than pure f32.
    np.testing.assert_allclose(np.asarray(out, dtype=np.float32),
                               np.asarray(ref_out, dtype=np.float32),
                               atol=2e-2, rtol=2e-2)
    np.testing.assert_allclose(np.asarray(attn.astype(jnp.float32)),
                               np.asarray(ref_attn, dtype=np.float32),
                               atol=2e-2, rtol=2e-2)

    print("KERNEL_OK")
</pallas_src>

<mosaic_0001>
module attributes {stable_mosaic.version = 11 : i64} {
  func.func @_mha_kernel(%arg0: i32, %arg1: i32, %arg2: memref<1x8x32xbf16, #tpu.memory_space<vmem>>, %arg3: memref<1x8x32xbf16, #tpu.memory_space<vmem>>, %arg4: memref<1x8x32xbf16, #tpu.memory_space<vmem>>, %arg5: memref<32x32xbf16, #tpu.memory_space<vmem>>, %arg6: memref<32x32xbf16, #tpu.memory_space<vmem>>, %arg7: memref<32x32xbf16, #tpu.memory_space<vmem>>, %arg8: memref<32x32xbf16, #tpu.memory_space<vmem>>, %arg9: memref<1x8x32xf32, #tpu.memory_space<vmem>>, %arg10: memref<1x4x8x8xbf16, #tpu.memory_space<vmem>>, %arg11: memref<8x32xbf16, #tpu.memory_space<vmem>>, %arg12: memref<8x32xbf16, #tpu.memory_space<vmem>>, %arg13: memref<8x32xbf16, #tpu.memory_space<vmem>>) attributes {dimension_semantics = [#tpu.dimension_semantics<parallel>, #tpu.dimension_semantics<arbitrary>], iteration_bounds = array<i64: 2, 1>, scalar_prefetch = 0 : i64, scratch_operands = 3 : i64, tpu.core_type = #tpu.core_type<tc>, window_params = [{transform_indices = @transform_0, window_bounds = array<i64: 1, 8, 32>}, {transform_indices = @transform_1, window_bounds = array<i64: 1, 8, 32>}, {transform_indices = @transform_2, window_bounds = array<i64: 1, 8, 32>}, {pipeline_mode = #tpu.pipeline_mode<synchronous>, transform_indices = @transform_3, window_bounds = array<i64: 32, 32>}, {pipeline_mode = #tpu.pipeline_mode<synchronous>, transform_indices = @transform_4, window_bounds = array<i64: 32, 32>}, {pipeline_mode = #tpu.pipeline_mode<synchronous>, transform_indices = @transform_5, window_bounds = array<i64: 32, 32>}, {pipeline_mode = #tpu.pipeline_mode<synchronous>, transform_indices = @transform_6, window_bounds = array<i64: 32, 32>}, {transform_indices = @transform_7, window_bounds = array<i64: 1, 8, 32>}, {transform_indices = @transform_8, window_bounds = array<i64: 1, 4, 8, 8>}]} {
    %c0_i32 = arith.constant 0 : i32
    %0 = arith.cmpi eq, %arg1, %c0_i32 : i32
    %1 = arith.extui %0 : i1 to i32
    %c0_i32_0 = arith.constant 0 : i32
    %2 = arith.cmpi ne, %1, %c0_i32_0 : i32
    scf.if %2 {
      %c0_63 = arith.constant 0 : index
      %c0_64 = arith.constant 0 : index
      %c0_65 = arith.constant 0 : index
      %102 = vector.load %arg3[%c0_63, %c0_64, %c0_65] : memref<1x8x32xbf16, #tpu.memory_space<vmem>>, vector<1x8x32xbf16>
      %103 = vector.shape_cast %102 : vector<1x8x32xbf16> to vector<8x32xbf16>
      %c0_66 = arith.constant 0 : index
      %c0_67 = arith.constant 0 : index
      %104 = vector.load %arg6[%c0_66, %c0_67] : memref<32x32xbf16, #tpu.memory_space<vmem>>, vector<32x32xbf16>
      %cst_68 = arith.constant dense<0.000000e+00> : vector<8x32xf32>
      %105 = tpu.matmul %103, %104, %cst_68 {dimension_numbers = #tpu.dot_dimension_numbers<[1], [0], [0], [1], [0, 0, 1, 1], [], []>} : vector<8x32xbf16>, vector<32x32xbf16>, vector<8x32xf32> -> vector<8x32xf32>
      %106 = arith.truncf %105 : vector<8x32xf32> to vector<8x32xbf16>
      %c0_69 = arith.constant 0 : index
      %c0_70 = arith.constant 0 : index
      %107 = vector.load %arg11[%c0_69, %c0_70] : memref<8x32xbf16, #tpu.memory_space<vmem>>, vector<8x32xbf16>
      tpu.vector_store %arg11[%c0_69, %c0_70], %106 {strides = array<i32>} : memref<8x32xbf16, #tpu.memory_space<vmem>>, vector<8x32xbf16>,
      %c0_71 = arith.constant 0 : index
      %c0_72 = arith.constant 0 : index
      %c0_73 = arith.constant 0 : index
      %108 = vector.load %arg4[%c0_71, %c0_72, %c0_73] : memref<1x8x32xbf16, #tpu.memory_space<vmem>>, vector<1x8x32xbf16>
      %109 = vector.shape_cast %108 : vector<1x8x32xbf16> to vector<8x32xbf16>
      %c0_74 = arith.constant 0 : index
      %c0_75 = arith.constant 0 : index
      %110 = vector.load %arg7[%c0_74, %c0_75] : memref<32x32xbf16, #tpu.memory_space<vmem>>, vector<32x32xbf16>
      %cst_76 = arith.constant dense<0.000000e+00> : vector<8x32xf32>
      %111 = tpu.matmul %109, %110, %cst_76 {dimension_numbers = #tpu.dot_dimension_numbers<[1], [0], [0], [1], [0, 0, 1, 1], [], []>} : vector<8x32xbf16>, vector<32x32xbf16>, vector<8x32xf32> -> vector<8x32xf32>
      %112 = arith.truncf %111 : vector<8x32xf32> to vector<8x32xbf16>
      %c0_77 = arith.constant 0 : index
      %c0_78 = arith.constant 0 : index
      %113 = vector.load %arg12[%c0_77, %c0_78] : memref<8x32xbf16, #tpu.memory_space<vmem>>, vector<8x32xbf16>
      tpu.vector_store %arg12[%c0_77, %c0_78], %112 {strides = array<i32>} : memref<8x32xbf16, #tpu.memory_space<vmem>>, vector<8x32xbf16>,
    } else {
    }
    %c0 = arith.constant 0 : index
    %c0_1 = arith.constant 0 : index
    %c0_2 = arith.constant 0 : index
    %3 = vector.load %arg2[%c0, %c0_1, %c0_2] : memref<1x8x32xbf16, #tpu.memory_space<vmem>>, vector<1x8x32xbf16>
    %4 = vector.shape_cast %3 : vector<1x8x32xbf16> to vector<8x32xbf16>
    %c0_3 = arith.constant 0 : index
    %c0_4 = arith.constant 0 : index
    %5 = vector.load %arg5[%c0_3, %c0_4] : memref<32x32xbf16, #tpu.memory_space<vmem>>, vector<32x32xbf16>
    %cst = arith.constant dense<0.000000e+00> : vector<8x32xf32>
    %6 = tpu.matmul %4, %5, %cst {dimension_numbers = #tpu.dot_dimension_numbers<[1], [0], [0], [1], [0, 0, 1, 1], [], []>} : vector<8x32xbf16>, vector<32x32xbf16>, vector<8x32xf32> -> vector<8x32xf32>
    %7 = arith.truncf %6 : vector<8x32xf32> to vector<8x32xbf16>
    %8 = vector.extract_strided_slice %7 {offsets = [0, 0], sizes = [8, 8], strides = [1, 1]} : vector<8x32xbf16> to vector<8x8xbf16>
    %c0_5 = arith.constant 0 : index
    %c0_6 = arith.constant 0 : index
    %9 = vector.load %arg11[%c0_5, %c0_6] : memref<8x32xbf16, #tpu.memory_space<vmem>>, vector<8x8xbf16>
    %c0_7 = arith.constant 0 : index
    %c0_8 = arith.constant 0 : index
    %10 = vector.load %arg12[%c0_7, %c0_8] : memref<8x32xbf16, #tpu.memory_space<vmem>>, vector<8x8xbf16>
    %cst_9 = arith.constant dense<0.000000e+00> : vector<8x8xf32>
    %11 = tpu.matmul %8, %9, %cst_9 {dimension_numbers = #tpu.dot_dimension_numbers<[1], [1], [0], [0], [0, 0, 1, 0], [], []>} : vector<8x8xbf16>, vector<8x8xbf16>, vector<8x8xf32> -> vector<8x8xf32>
    %cst_10 = arith.constant dense<0xFF800000> : vector<8xf32>
    %12 = vector.multi_reduction <maximumf>, %11, %cst_10 [1] : vector<8x8xf32> to vector<8xf32>
    %13 = vector.shape_cast %12 : vector<8xf32> to vector<8x1xf32>
    %14 = vector.broadcast %13 : vector<8x1xf32> to vector<8x8xf32>
    %15 = arith.subf %11, %14 : vector<8x8xf32>
    %16 = math.exp %15 : vector<8x8xf32>
    %cst_11 = arith.constant dense<0.000000e+00> : vector<8xf32>
    %17 = vector.multi_reduction <add>, %16, %cst_11 [1] : vector<8x8xf32> to vector<8xf32>
    %18 = vector.shape_cast %17 : vector<8xf32> to vector<8x1xf32>
    %19 = tpu.reciprocal %18 : vector<8x1xf32> -> vector<8x1xf32>
    %20 = vector.broadcast %19 : vector<8x1xf32> to vector<8x8xf32>
    %21 = arith.mulf %16, %20 : vector<8x8xf32>
    %22 = arith.truncf %21 : vector<8x8xf32> to vector<8x8xbf16>
    %c0_12 = arith.constant 0 : index
    %c0_13 = arith.constant 0 : index
    %c0_14 = arith.constant 0 : index
    %c0_15 = arith.constant 0 : index
    %23 = vector.load %arg10[%c0_12, %c0_13, %c0_14, %c0_15] : memref<1x4x8x8xbf16, #tpu.memory_space<vmem>>, vector<1x1x8x8xbf16>
    %24 = vector.shape_cast %23 : vector<1x1x8x8xbf16> to vector<8x8xbf16>
    %25 = vector.shape_cast %22 : vector<8x8xbf16> to vector<1x1x8x8xbf16>
    tpu.vector_store %arg10[%c0_12, %c0_13, %c0_14, %c0_15], %25 {strides = array<i32>} : memref<1x4x8x8xbf16, #tpu.memory_space<vmem>>, vector<1x1x8x8xbf16>,
    %26 = arith.truncf %21 : vector<8x8xf32> to vector<8x8xbf16>
    %cst_16 = arith.constant dense<0.000000e+00> : vector<8x8xf32>
    %27 = tpu.matmul %26, %10, %cst_16 {dimension_numbers = #tpu.dot_dimension_numbers<[1], [0], [0], [1], [0, 0, 1, 1], [], []>} : vector<8x8xbf16>, vector<8x8xbf16>, vector<8x8xf32> -> vector<8x8xf32>
    %28 = arith.truncf %27 : vector<8x8xf32> to vector<8x8xbf16>
    %c0_17 = arith.constant 0 : index
    %c0_18 = arith.constant 0 : index
    %29 = vector.load %arg13[%c0_17, %c0_18] : memref<8x32xbf16, #tpu.memory_space<vmem>>, vector<8x8xbf16>
    tpu.vector_store %arg13[%c0_17, %c0_18], %28 {strides = array<i32>} : memref<8x32xbf16, #tpu.memory_space<vmem>>, vector<8x8xbf16>,
    %30 = vector.extract_strided_slice %7 {offsets = [0, 8], sizes = [8, 8], strides = [1, 1]} : vector<8x32xbf16> to vector<8x8xbf16>
    %c0_19 = arith.constant 0 : index
    %c8 = arith.constant 8 : index
    %31 = vector.load %arg11[%c0_19, %c8] : memref<8x32xbf16, #tpu.memory_space<vmem>>, vector<8x8xbf16>
    %c0_20 = arith.constant 0 : index
    %c8_21 = arith.constant 8 : index
    %32 = vector.load %arg12[%c0_20, %c8_21] : memref<8x32xbf16, #tpu.memory_space<vmem>>, vector<8x8xbf16>
    %cst_22 = arith.constant dense<0.000000e+00> : vector<8x8xf32>
    %33 = tpu.matmul %30, %31, %cst_22 {dimension_numbers = #tpu.dot_dimension_numbers<[1], [1], [0], [0], [0, 0, 1, 0], [], []>} : vector<8x8xbf16>, vector<8x8xbf16>, vector<8x8xf32> -> vector<8x8xf32>
    %cst_23 = arith.constant dense<0xFF800000> : vector<8xf32>
    %34 = vector.multi_reduction <maximumf>, %33, %cst_23 [1] : vector<8x8xf32> to vector<8xf32>
    %35 = vector.shape_cast %34 : vector<8xf32> to vector<8x1xf32>
    %36 = vector.broadcast %35 : vector<8x1xf32> to vector<8x8xf32>
    %37 = arith.subf %33, %36 : vector<8x8xf32>
    %38 = math.exp %37 : vector<8x8xf32>
    %cst_24 = arith.constant dense<0.000000e+00> : vector<8xf32>
    %39 = vector.multi_reduction <add>, %38, %cst_24 [1] : vector<8x8xf32> to vector<8xf32>
    %40 = vector.shape_cast %39 : vector<8xf32> to vector<8x1xf32>
    %41 = tpu.reciprocal %40 : vector<8x1xf32> -> vector<8x1xf32>
    %42 = vector.broadcast %41 : vector<8x1xf32> to vector<8x8xf32>
    %43 = arith.mulf %38, %42 : vector<8x8xf32>
    %44 = arith.truncf %43 : vector<8x8xf32> to vector<8x8xbf16>
    %c0_25 = arith.constant 0 : index
    %c1 = arith.constant 1 : index
    %c0_26 = arith.constant 0 : index
    %c0_27 = arith.constant 0 : index
    %45 = vector.load %arg10[%c0_25, %c1, %c0_26, %c0_27] : memref<1x4x8x8xbf16, #tpu.memory_space<vmem>>, vector<1x1x8x8xbf16>
    %46 = vector.shape_cast %45 : vector<1x1x8x8xbf16> to vector<8x8xbf16>
    %47 = vector.shape_cast %44 : vector<8x8xbf16> to vector<1x1x8x8xbf16>
    tpu.vector_store %arg10[%c0_25, %c1, %c0_26, %c0_27], %47 {strides = array<i32>} : memref<1x4x8x8xbf16, #tpu.memory_space<vmem>>, vector<1x1x8x8xbf16>,
    %48 = arith.truncf %43 : vector<8x8xf32> to vector<8x8xbf16>
    %cst_28 = arith.constant dense<0.000000e+00> : vector<8x8xf32>
    %49 = tpu.matmul %48, %32, %cst_28 {dimension_numbers = #tpu.dot_dimension_numbers<[1], [0], [0], [1], [0, 0, 1, 1], [], []>} : vector<8x8xbf16>, vector<8x8xbf16>, vector<8x8xf32> -> vector<8x8xf32>
    %50 = arith.truncf %49 : vector<8x8xf32> to vector<8x8xbf16>
    %c0_29 = arith.constant 0 : index
    %c8_30 = arith.constant 8 : index
    %51 = vector.load %arg13[%c0_29, %c8_30] : memref<8x32xbf16, #tpu.memory_space<vmem>>, vector<8x8xbf16>
    tpu.vector_store %arg13[%c0_29, %c8_30], %50 {strides = array<i32>} : memref<8x32xbf16, #tpu.memory_space<vmem>>, vector<8x8xbf16>,
    %52 = vector.extract_strided_slice %7 {offsets = [0, 16], sizes = [8, 8], strides = [1, 1]} : vector<8x32xbf16> to vector<8x8xbf16>
    %c0_31 = arith.constant 0 : index
    %c16 = arith.constant 16 : index
    %53 = vector.load %arg11[%c0_31, %c16] : memref<8x32xbf16, #tpu.memory_space<vmem>>, vector<8x8xbf16>
    %c0_32 = arith.constant 0 : index
    %c16_33 = arith.constant 16 : index
    %54 = vector.load %arg12[%c0_32, %c16_33] : memref<8x32xbf16, #tpu.memory_space<vmem>>, vector<8x8xbf16>
    %cst_34 = arith.constant dense<0.000000e+00> : vector<8x8xf32>
    %55 = tpu.matmul %52, %53, %cst_34 {dimension_numbers = #tpu.dot_dimension_numbers<[1], [1], [0], [0], [0, 0, 1, 0], [], []>} : vector<8x8xbf16>, vector<8x8xbf16>, vector<8x8xf32> -> vector<8x8xf32>
    %cst_35 = arith.constant dense<0xFF800000> : vector<8xf32>
    %56 = vector.multi_reduction <maximumf>, %55, %cst_35 [1] : vector<8x8xf32> to vector<8xf32>
    %57 = vector.shape_cast %56 : vector<8xf32> to vector<8x1xf32>
    %58 = vector.broadcast %57 : vector<8x1xf32> to vector<8x8xf32>
    %59 = arith.subf %55, %58 : vector<8x8xf32>
    %60 = math.exp %59 : vector<8x8xf32>
    %cst_36 = arith.constant dense<0.000000e+00> : vector<8xf32>
    %61 = vector.multi_reduction <add>, %60, %cst_36 [1] : vector<8x8xf32> to vector<8xf32>
    %62 = vector.shape_cast %61 : vector<8xf32> to vector<8x1xf32>
    %63 = tpu.reciprocal %62 : vector<8x1xf32> -> vector<8x1xf32>
    %64 = vector.broadcast %63 : vector<8x1xf32> to vector<8x8xf32>
    %65 = arith.mulf %60, %64 : vector<8x8xf32>
    %66 = arith.truncf %65 : vector<8x8xf32> to vector<8x8xbf16>
    %c0_37 = arith.constant 0 : index
    %c2 = arith.constant 2 : index
    %c0_38 = arith.constant 0 : index
    %c0_39 = arith.constant 0 : index
    %67 = vector.load %arg10[%c0_37, %c2, %c0_38, %c0_39] : memref<1x4x8x8xbf16, #tpu.memory_space<vmem>>, vector<1x1x8x8xbf16>
    %68 = vector.shape_cast %67 : vector<1x1x8x8xbf16> to vector<8x8xbf16>
    %69 = vector.shape_cast %66 : vector<8x8xbf16> to vector<1x1x8x8xbf16>
    tpu.vector_store %arg10[%c0_37, %c2, %c0_38, %c0_39], %69 {strides = array<i32>} : memref<1x4x8x8xbf16, #tpu.memory_space<vmem>>, vector<1x1x8x8xbf16>,
    %70 = arith.truncf %65 : vector<8x8xf32> to vector<8x8xbf16>
    %cst_40 = arith.constant dense<0.000000e+00> : vector<8x8xf32>
    %71 = tpu.matmul %70, %54, %cst_40 {dimension_numbers = #tpu.dot_dimension_numbers<[1], [0], [0], [1], [0, 0, 1, 1], [], []>} : vector<8x8xbf16>, vector<8x8xbf16>, vector<8x8xf32> -> vector<8x8xf32>
    %72 = arith.truncf %71 : vector<8x8xf32> to vector<8x8xbf16>
    %c0_41 = arith.constant 0 : index
    %c16_42 = arith.constant 16 : index
    %73 = vector.load %arg13[%c0_41, %c16_42] : memref<8x32xbf16, #tpu.memory_space<vmem>>, vector<8x8xbf16>
    tpu.vector_store %arg13[%c0_41, %c16_42], %72 {strides = array<i32>} : memref<8x32xbf16, #tpu.memory_space<vmem>>, vector<8x8xbf16>,
    %74 = vector.extract_strided_slice %7 {offsets = [0, 24], sizes = [8, 8], strides = [1, 1]} : vector<8x32xbf16> to vector<8x8xbf16>
    %c0_43 = arith.constant 0 : index
    %c24 = arith.constant 24 : index
    %75 = vector.load %arg11[%c0_43, %c24] : memref<8x32xbf16, #tpu.memory_space<vmem>>, vector<8x8xbf16>
    %c0_44 = arith.constant 0 : index
    %c24_45 = arith.constant 24 : index
    %76 = vector.load %arg12[%c0_44, %c24_45] : memref<8x32xbf16, #tpu.memory_space<vmem>>, vector<8x8xbf16>
    %cst_46 = arith.constant dense<0.000000e+00> : vector<8x8xf32>
    %77 = tpu.matmul %74, %75, %cst_46 {dimension_numbers = #tpu.dot_dimension_numbers<[1], [1], [0], [0], [0, 0, 1, 0], [], []>} : vector<8x8xbf16>, vector<8x8xbf16>, vector<8x8xf32> -> vector<8x8xf32>
    %cst_47 = arith.constant dense<0xFF800000> : vector<8xf32>
    %78 = vector.multi_reduction <maximumf>, %77, %cst_47 [1] : vector<8x8xf32> to vector<8xf32>
    %79 = vector.shape_cast %78 : vector<8xf32> to vector<8x1xf32>
    %80 = vector.broadcast %79 : vector<8x1xf32> to vector<8x8xf32>
    %81 = arith.subf %77, %80 : vector<8x8xf32>
    %82 = math.exp %81 : vector<8x8xf32>
    %cst_48 = arith.constant dense<0.000000e+00> : vector<8xf32>
    %83 = vector.multi_reduction <add>, %82, %cst_48 [1] : vector<8x8xf32> to vector<8xf32>
    %84 = vector.shape_cast %83 : vector<8xf32> to vector<8x1xf32>
    %85 = tpu.reciprocal %84 : vector<8x1xf32> -> vector<8x1xf32>
    %86 = vector.broadcast %85 : vector<8x1xf32> to vector<8x8xf32>
    %87 = arith.mulf %82, %86 : vector<8x8xf32>
    %88 = arith.truncf %87 : vector<8x8xf32> to vector<8x8xbf16>
    %c0_49 = arith.constant 0 : index
    %c3 = arith.constant 3 : index
    %c0_50 = arith.constant 0 : index
    %c0_51 = arith.constant 0 : index
    %89 = vector.load %arg10[%c0_49, %c3, %c0_50, %c0_51] : memref<1x4x8x8xbf16, #tpu.memory_space<vmem>>, vector<1x1x8x8xbf16>
    %90 = vector.shape_cast %89 : vector<1x1x8x8xbf16> to vector<8x8xbf16>
    %91 = vector.shape_cast %88 : vector<8x8xbf16> to vector<1x1x8x8xbf16>
    tpu.vector_store %arg10[%c0_49, %c3, %c0_50, %c0_51], %91 {strides = array<i32>} : memref<1x4x8x8xbf16, #tpu.memory_space<vmem>>, vector<1x1x8x8xbf16>,
    %92 = arith.truncf %87 : vector<8x8xf32> to vector<8x8xbf16>
    %cst_52 = arith.constant dense<0.000000e+00> : vector<8x8xf32>
    %93 = tpu.matmul %92, %76, %cst_52 {dimension_numbers = #tpu.dot_dimension_numbers<[1], [0], [0], [1], [0, 0, 1, 1], [], []>} : vector<8x8xbf16>, vector<8x8xbf16>, vector<8x8xf32> -> vector<8x8xf32>
    %94 = arith.truncf %93 : vector<8x8xf32> to vector<8x8xbf16>
    %c0_53 = arith.constant 0 : index
    %c24_54 = arith.constant 24 : index
    %95 = vector.load %arg13[%c0_53, %c24_54] : memref<8x32xbf16, #tpu.memory_space<vmem>>, vector<8x8xbf16>
    tpu.vector_store %arg13[%c0_53, %c24_54], %94 {strides = array<i32>} : memref<8x32xbf16, #tpu.memory_space<vmem>>, vector<8x8xbf16>,
    %c0_55 = arith.constant 0 : index
    %c0_56 = arith.constant 0 : index
    %96 = vector.load %arg13[%c0_55, %c0_56] : memref<8x32xbf16, #tpu.memory_space<vmem>>, vector<8x32xbf16>
    %c0_57 = arith.constant 0 : index
    %c0_58 = arith.constant 0 : index
    %97 = vector.load %arg8[%c0_57, %c0_58] : memref<32x32xbf16, #tpu.memory_space<vmem>>, vector<32x32xbf16>
    %cst_59 = arith.constant dense<0.000000e+00> : vector<8x32xf32>
    %98 = tpu.matmul %96, %97, %cst_59 {dimension_numbers = #tpu.dot_dimension_numbers<[1], [0], [0], [1], [0, 0, 1, 1], [], []>} : vector<8x32xbf16>, vector<32x32xbf16>, vector<8x32xf32> -> vector<8x32xf32>
    %c0_60 = arith.constant 0 : index
    %c0_61 = arith.constant 0 : index
    %c0_62 = arith.constant 0 : index
    %99 = vector.load %arg9[%c0_60, %c0_61, %c0_62] : memref<1x8x32xf32, #tpu.memory_space<vmem>>, vector<1x8x32xf32>
    %100 = vector.shape_cast %99 : vector<1x8x32xf32> to vector<8x32xf32>
    %101 = vector.shape_cast %98 : vector<8x32xf32> to vector<1x8x32xf32>
    tpu.vector_store %arg9[%c0_60, %c0_61, %c0_62], %101 {strides = array<i32>} : memref<1x8x32xf32, #tpu.memory_space<vmem>>, vector<1x8x32xf32>,
    return
  }
  func.func @transform_0(%arg0: i32, %arg1: i32) -> (i32, i32, i32) {
    %c0_i32 = arith.constant 0 : i32
    %c0_i32_0 = arith.constant 0 : i32
    return %arg0, %arg1, %c0_i32 : i32, i32, i32
  }
  func.func @transform_1(%arg0: i32, %arg1: i32) -> (i32, i32, i32) {
    %c0_i32 = arith.constant 0 : i32
    %c0_i32_0 = arith.constant 0 : i32
    %c0_i32_1 = arith.constant 0 : i32
    return %arg0, %c0_i32, %c0_i32_0 : i32, i32, i32
  }
  func.func @transform_2(%arg0: i32, %arg1: i32) -> (i32, i32, i32) {
    %c0_i32 = arith.constant 0 : i32
    %c0_i32_0 = arith.constant 0 : i32
    %c0_i32_1 = arith.constant 0 : i32
    return %arg0, %c0_i32, %c0_i32_0 : i32, i32, i32
  }
  func.func @transform_3(%arg0: i32, %arg1: i32) -> (i32, i32) {
    %c0_i32 = arith.constant 0 : i32
    %c0_i32_0 = arith.constant 0 : i32
    %c0_i32_1 = arith.constant 0 : i32
    return %c0_i32, %c0_i32_0 : i32, i32
  }
  func.func @transform_4(%arg0: i32, %arg1: i32) -> (i32, i32) {
    %c0_i32 = arith.constant 0 : i32
    %c0_i32_0 = arith.constant 0 : i32
    %c0_i32_1 = arith.constant 0 : i32
    return %c0_i32, %c0_i32_0 : i32, i32
  }
  func.func @transform_5(%arg0: i32, %arg1: i32) -> (i32, i32) {
    %c0_i32 = arith.constant 0 : i32
    %c0_i32_0 = arith.constant 0 : i32
    %c0_i32_1 = arith.constant 0 : i32
    return %c0_i32, %c0_i32_0 : i32, i32
  }
  func.func @transform_6(%arg0: i32, %arg1: i32) -> (i32, i32) {
    %c0_i32 = arith.constant 0 : i32
    %c0_i32_0 = arith.constant 0 : i32
    %c0_i32_1 = arith.constant 0 : i32
    return %c0_i32, %c0_i32_0 : i32, i32
  }
  func.func @transform_7(%arg0: i32, %arg1: i32) -> (i32, i32, i32) {
    %c0_i32 = arith.constant 0 : i32
    %c0_i32_0 = arith.constant 0 : i32
    return %arg0, %arg1, %c0_i32 : i32, i32, i32
  }
  func.func @transform_8(%arg0: i32, %arg1: i32) -> (i32, i32, i32, i32) {
    %c0_i32 = arith.constant 0 : i32
    %c0_i32_0 = arith.constant 0 : i32
    %c0_i32_1 = arith.constant 0 : i32
    return %arg0, %c0_i32, %arg1, %c0_i32_0 : i32, i32, i32, i32
  }
}

</mosaic_0001>

<bundles_post_ra>
// kernel: tpu_custom_call.1
= control target key start
LH: loop header
LB: loop body
LE: loop exit
PB: predicated region body
PF: predicated region fallthrough
CT: control target
= control target key end

     0   :  { %s2140_s0 = inlined_call_operand.hbm [shape: bf16[2,8,32], index: 0, kind: input, shape index: {}]   ;;  %s2141_s1 = inlined_call_operand.hbm [shape: bf16[2,8,32], index: 1, kind: input, shape index: {}]   ;;  %s2142_s2 = inlined_call_operand.hbm [shape: bf16[2,8,32], index: 2, kind: input, shape index: {}]   ;;  %s2143_s3 = inlined_call_operand.hbm [shape: bf16[32,32], index: 3, kind: input, shape index: {}]   ;;  %s2144_s4 = inlined_call_operand.hbm [shape: bf16[32,32], index: 4, kind: input, shape index: {}]   ;;  %s2145_s5 = inlined_call_operand.hbm [shape: bf16[32,32], index: 5, kind: input, shape index: {}]   ;;  %s2146_s6 = inlined_call_operand.hbm [shape: bf16[32,32], index: 6, kind: input, shape index: {}]   ;;  %s2147_s7 = inlined_call_operand.hbm [shape: f32[2,8,32], index: 7, kind: output, shape index: {0}]   ;;  %s2148_s8 = inlined_call_operand.hbm [shape: bf16[2,4,8,8], index: 8, kind: output, shape index: {1}]  }
   0x1   :  { %2159 = sst [smem:[#allocation31_spill]] %s2140_s0 }
   0x2   :  { %2160 = sst [smem:[#allocation32_spill]] %s2141_s1 }
   0x3   :  { %2161 = sst [smem:[#allocation33_spill]] %s2143_s3 }
   0x4   :  { %2162 = sst [smem:[#allocation34_spill]] %s2144_s4 }
   0x5   :  { %2163 = sst [smem:[#allocation35_spill]] %s2145_s5 }
   0x6   :  { %2164 = sst [smem:[#allocation36_spill]] %s2146_s6 }
   0x7   :  { %14 = vsyncpa [#allocation6], 0 }
   0x8   :  { %16 = vsyncpa [#allocation6 + $0x1], 0 }
   0x9   :  { %17 = vsyncpa [#allocation9], 0 }
   0xa   :  { %19 = vsyncpa [#allocation9 + $0x1], 0 }
   0xb   :  { %20 = vsyncpa [#allocation12], 0 }
   0xc   :  { %21 = vsyncpa [#allocation15], 0 }
   0xd   :  { %22 = vsyncpa [#allocation7], 0 }
   0xe   :  { %24 = vsyncpa [#allocation7 + $0x1], 0 }
   0xf   :  { %25 = vsyncpa [#allocation19], 0 }
  0x10   :  { %27 = vsyncpa [#allocation19 + $0x1], 0  ;;  %s1836_s27 = smov 0   ;;  %s1838_s28 = smov 0  }
  0x11   :  { %s1840_s29 = smov 0   ;;  %s1842_s30 = smov 0  }
  0x12   :  { %s1844_s9 = smov 0   ;;  %s1846_s10 = smov 0  }
  0x13 LB: > { %2165 = sst [smem:[#allocation26_spill]] %s1771_s9  ;;  %s1867_s11 = sadd.s32 4294967295, %s1775_s10   ;;  %s1775_s10 = sphi %s1846_s10, %s33_s10   ;;  %s1771_s9 = sphi %s1844_s9, %s2190_s9   ;;  %s1767_s30 = sphi %s1842_s30, %s2189_s30   ;;  %s1763_s29 = sphi %s1840_s29, %s2193_s29   ;;  %s1759_s28 = sphi %s1838_s28, %s2192_s28   ;;  %s1755_s27 = sphi %s1836_s27, %s2191_s27  }
  0x14   : > { %2166 = sst [smem:[#allocation27_spill]] %s1775_s10  ;;  %p1210_p0 = scmp.ge.s32.totalorder %s1775_s10, 1 }
  0x15   : > { %p68_p1 = scmp.eq.s32.totalorder %s1867_s11, 0  ;;  %p270_p2 = scmp.lt.s32.totalorder %s1775_s10, 3 }
  0x16   : > { %s2167_s3 = sld [smem:[#allocation33_spill]]  ;;  %s1777_s16 = smov [#allocation11]  }
  0x17   : > { %p1875_p3 = pnand %p1210_p0, %p270_p2  ;;  %s283_s17 = sshll.u32 %s1777_s16, 4  ;;  %s284_s17 = int_to_ptr.vmem [resolvable:$true] %s283_s17 }
  0x18   : > { %p1215_p6 = scmp.ge.s32.totalorder %s1775_s10, 2  ;;  %s2170_s5 = sld [smem:[#allocation35_spill]] }
  0x19   : > { %p1321_p4 = pneg %p1875_p3  ;;  %s2149_s22 = smov 64  }
  0x1a   : > { %s2151_s23 = smov 4   ;;  %s1780_s24 = smov [#allocation14]  }
  0x1b   : > { %p1883_p5 = pnand %p1321_p4, %p68_p1  ;;  %s311_s25 = sshll.u32 %s1780_s24, 4  ;;  %s312_s25 = int_to_ptr.vmem [resolvable:$true] %s311_s25 }
  0x1c   : > { %s281_s14 = sshll.u32 %s2167_s3, 4  ;;  %s1209_s26 = sadd.s32 4294967294, %s1775_s10   ;;  %s282_s14 = int_to_ptr.hbm [resolvable:$true] %s281_s14 }
  0x1d   : > { %1324 = dma.hbm_to_vmem [thread:$0]  (!%p1883_p5), %s282_s14, 256, %s284_s17, [#allocation12], %s2149_s22, %s2149_s22, %s2151_s23  }
  0x1e   : > { %s309_s21 = sshll.u32 %s2170_s5, 4  ;;  %s45_s12 = sadd.s32 1, %s1771_s9  ;;  %s310_s21 = int_to_ptr.hbm [resolvable:$true] %s309_s21 }
  0x1f   : > { %1330 = dma.hbm_to_vmem [thread:$0]  (!%p1883_p5), %s310_s21, 256, %s312_s25, [#allocation15], %s2149_s22, %s2149_s22, %s2151_s23  }
  0x20   : > { %p47_p7 = scmp.ge.s32.totalorder %s45_s12, 2  ;;  %s54_s13 = sadd.s32 1, %s1763_s29 }
  0x21   : > { %p61_p8 = scmp.ne.s32.totalorder %s1763_s29, %s1759_s28  ;;  %p62_p9 = scmp.eq.s32.totalorder %s1775_s10, 0 }
  0x22   : > { %s2195_s12 = smov (%p47_p7, %s45_s12), 0  ;;  %p67_p11 = scmp.ne.s32.totalorder %s1759_s28, %s1755_s27 }
  0x23   : > { %2171 = sst [smem:[#allocation28_spill]] %s2195_s12  ;;  %p1909_p10 = por %p62_p9, %p61_p8 }
  0x24   : > { %s49_s16 = ssub.s32 %s1771_s9, %s2195_s12  ;;  %p229_p12 = scmp.eq.s32.totalorder %s1867_s11, 1 }
  0x25   : > { %p52_p13 = scmp.eq.s32.totalorder %s49_s16, 0  ;;  %p1920_p0 = por %p68_p1, %p67_p11 }
  0x26   : > { %p1924_p2 = por %p229_p12, %p61_p8  ;;  %p235_p4 = scmp.eq.s32.totalorder %s1209_s26, 1 }
  0x27   : > { %s1929_s20 = scalar_select %p52_p13, %s1763_s29, %s54_s13  }
  0x28   : > { %p1931_p7 = por %p235_p4, %p67_p11  ;;  %p1355_p9 = scmp.lt.s32.totalorder %s1775_s10, 2 }
  0x29   : > { %2175 = sst [smem:[#allocation29_spill]] %s1929_s20  ;;  %s2155_s24 = sand.u32 1, %s1763_s29  }
  0x2a   : > { %s2176_s21 = scalar_select %p1931_p7, 1, 0 }
  0x2b   : > { %s1938_s25 = sshll.u32 %s1771_s9, 2  ;;  %s1942_s16 = sshll.u32 %s2155_s24, 2 }
  0x2c   : > { %2177 = sst [smem:[#allocation30_spill]] %s2176_s21  ;;  %p1946_p8 = pnand %p1355_p9, %p1909_p10 }
  0x2d   : > { %s359_s26 = sand.u32 1, %s1775_s10   ;;  %s2179_s1 = sld [smem:[#allocation32_spill]] }
  0x2e   : > { %s363_s5 = scalar_lea.vmem [#allocation8], %s1942_s16  ;;  %s2180_s4 = sld [smem:[#allocation34_spill]] }
  0x2f   : > { %s371_s12 = sshll.u32 %s363_s5, 4  ;;  %s360_s21 = scalar_lea.sflag [#allocation9], %s359_s26  ;;  %s372_s12 = int_to_ptr.vmem [resolvable:$true] %s371_s12 }
  0x30   : > { %s1781_s10 = smov [#allocation13]   ;;  %s2181_s6 = sld [smem:[#allocation36_spill]] }
  0x31   : > { %s297_s23 = sshll.u32 %s1781_s10, 4  ;;  %s2182_s5 = smov 4   ;;  %s298_s23 = int_to_ptr.vmem [resolvable:$true] %s297_s23 }
  0x32   : > { %s2183_s24 = smov 64   ;;  %s1782_s26 = smov [#allocation16]  }
  0x33   : > { %s367_s3 = scalar_lea.hbm %s2179_s1, %s1938_s25  ;;  %s2184_s0 = sld [smem:[#allocation31_spill]] }
  0x34   : > { %s369_s9 = sshll.u32 %s367_s3, 4  ;;  %s295_s20 = sshll.u32 %s2180_s4, 4  ;;  %s370_s9 = int_to_ptr.hbm [resolvable:$true] %s369_s9  ;;  %s296_s20 = int_to_ptr.hbm [resolvable:$true] %s295_s20 }
  0x35   : > { %1340 = dma.hbm_to_vmem [thread:$0]  (!%p1946_p8), %s370_s9, 64, %s372_s12, %s360_s21  }
  0x36   : > { %s323_s3 = sshll.u32 %s2181_s6, 4  ;;  %s325_s9 = sshll.u32 %s1782_s26, 4  ;;  %s324_s3 = int_to_ptr.hbm [resolvable:$true] %s323_s3  ;;  %s326_s9 = int_to_ptr.vmem [resolvable:$true] %s325_s9 }
  0x37   : > { %1327 = dma.hbm_to_vmem [thread:$0]  (!%p1883_p5), %s296_s20, 256, %s298_s23, [#allocation12], %s2183_s24, %s2183_s24, %s2182_s5  }
  0x38   : > { %1333 = dma.hbm_to_vmem [thread:$0]  (!%p1883_p5), %s324_s3, 256, %s326_s9, [#allocation15], %s2183_s24, %s2183_s24, %s2182_s5  }
  0x39   : > { %s348_s10 = scalar_lea.hbm %s2184_s0, %s1938_s25  ;;  %s343_s13 = scalar_lea.vmem [#allocation5], %s1942_s16 }
  0x3a   : > { %s350_s1 = sshll.u32 %s348_s10, 4  ;;  %s352_s4 = sshll.u32 %s343_s13, 4  ;;  %s351_s1 = int_to_ptr.hbm [resolvable:$true] %s350_s1  ;;  %s353_s4 = int_to_ptr.vmem [resolvable:$true] %s352_s4 }
  0x3b   : > { %s2185_s6 = sand.u32 1, %s1763_s29   ;;  %s386_s12 = scalar_lea.hbm %s2142_s2, %s1938_s25 }
  0x3c   : > { %s340_s20 = scalar_lea.sflag [#allocation6], %s2185_s6  ;;  %s388_s14 = sshll.u32 %s386_s12, 4  ;;  %s389_s14 = int_to_ptr.hbm [resolvable:$true] %s388_s14 }
  0x3d   : > { %1337 = dma.hbm_to_vmem [thread:$0]  (!%p1946_p8), %s351_s1, 64, %s353_s4, %s340_s20  }
  0x3e   : > { %s382_s0 = scalar_lea.vmem [#allocation10], %s1942_s16  ;;  %399 = sbr.rel (%p1875_p3) target bundleno = 1163 (0x48b), region = 48 }
  0x3f   : > { %s390_s18 = sshll.u32 %s382_s0, 4  ;;  %s1993_s3 = sand.u32 (!%p1875_p3), 1, %s1759_s28   ;;  %s391_s18 = int_to_ptr.vmem [resolvable:$true] %s390_s18 }
  0x40   : > { %1343 = dma.hbm_to_vmem [thread:$0]  (!%p1946_p8), %s389_s14, 64, %s391_s18, %s360_s21  }
  0x41   : > { %s1996_s4 = sshll.u32 (!%p1875_p3), %s1993_s3, 2  ;;  %s402_s6 = scalar_lea.sflag (!%p1875_p3), [#allocation6], %s1993_s3 }
  0x42   : > { %s405_s25 = scalar_lea.vmem (!%p1875_p3), [#allocation5], %s1996_s4 }
  0x43   : > { %1730 = dma.done.wait (%p1920_p0), %s402_s6, 64  }
  0x44   : > { %1732 = vsyncadd (%p1920_p0), %s402_s6, 4294967232  ;;  %s411_s0 = sand.u32 1, %s1867_s11   ;;  %s415_s22 = scalar_lea.vmem [#allocation8], %s1996_s4 }
  0x45   : > { %s412_s15 = scalar_lea.sflag [#allocation9], %s411_s0 }
  0x46   : > { %1734 = dma.done.wait (%p1920_p0), %s412_s15, 128  }
  0x47   : > { %1736 = vsyncadd (%p1920_p0), %s412_s15, 4294967168  ;;  %s425_s21 = scalar_lea.vmem [#allocation10], %s1996_s4 }
  0x48   : > { %1738 = dma.done.wait (%p68_p1), [#allocation12], 512  }
  0x49   : > { %1740 = vsyncadd (%p68_p1), [#allocation12], 4294966784 }
  0x4a   : > { %1742 = dma.done.wait (%p68_p1), [#allocation15], 512  }
  0x4b   : > { %1744 = vsyncadd (%p68_p1), [#allocation15], 4294966784  ;;  %v1287_v0 = vld [vmem:[#allocation13 + $0x8] sm:$0xff]  ;;  %v1291_v1 = vld [vmem:[#allocation11 + $0x8] sm:$0xff]  ;;  %vm516_vm0 = vcmask 261120   ;;  %vm534_vm1 = vcmask 257024  }
  0x4c   : > { %526 = vmatpush.bf16.msra.mxu0 %v1287_v0  ;;  %598 = vmatpush.bf16.msra.mxu2 %v1291_v1  ;;  %v1286_v2 = vld [vmem:[#allocation13] sm:$0xff]  ;;  %v1290_v3 = vld [vmem:[#allocation11] sm:$0xff]  ;;  %v571_v5 = vld [vmem:[%s405_s25] sm:$0xf]  ;;  %vm608_vm2 = vcmask 64512   ;;  %s1783_s11 = smov 112  }
  0x4d   : > { %v499_v4 = vld [vmem:[%s415_s22] sm:$0xf]  ;;  %s1784_s17 = smov 120   ;;  %s1785_s16 = smov 104   ;;  %v1289_v25 = vld [vmem:[#allocation14 + $0x8] sm:$0xff]  ;;  %v1288_v26 = vld [vmem:[#allocation14] sm:$0xff] }
  0x4e   : > { %562 = vmatpush.bf16.msra.mxu1 %v1289_v25  ;;  %v536_v27 = vld [vmem:[%s425_s21] sm:$0xf]  ;;  %vm658_vm3 = vcmask 1043456   ;;  %s1231_s5 = sshll.u32 %s1993_s3, 4  ;;  %vm653_vm8 = vcmask 60416   ;;  %s1786_s9 = smov 8  }
  0x4f   : > { %s2061_s24 = scalar_lea.vmem [#allocation18], %s1231_s5  ;;  %s1787_s10 = smov 24  }
  0x50   : > { %527 = vmatpush.bf16.msra.mxu0 %v1286_v2  ;;  %599 = vmatpush.bf16.msra.mxu2 %v1290_v3  ;;  %s1788_s1 = smov 16   ;;  %s1294_s13 = sshll.u32 %s1767_s30, 4 }
  0x51   : > { %s1005_s26 = scalar_lea.hbm %s2148_s8, %s1294_s13  ;;  %s1006_s12 = sshll.u32 %s2061_s24, 4  ;;  %s1007_s12 = int_to_ptr.vmem [resolvable:$true] %s1006_s12 }
  0x52   : > { %563 = vmatpush.bf16.msra.mxu1 %v1288_v26  ;;  %s1008_s14 = sshll.u32 %s1005_s26, 4  ;;  %s978_s18 = scalar_lea.sflag [#allocation19], %s1993_s3  ;;  %s1009_s14 = int_to_ptr.hbm [resolvable:$true] %s1008_s14 }
  0x53   : > { %1240 = vmatmul.msk.bf16.vlgmr.msra.gmra.mxu0 %vm516_vm0, %v499_v4  ;;  %1258 = vmatmul.msk.bf16.vlgmr.msra.gmra.mxu2 %vm516_vm0, %v571_v5  ;;  %s1663_s4 = sshra.s32 %s1009_s14, 4  ;;  %s1669_s15 = scalar_lea.hbm %s2148_s8, 32  ;;  %s1664_s4 = int_to_ptr.hbm [resolvable:$true] %s1663_s4 }
  0x54   : > { %s1665_s6 = scalar_lea.hbm %s1664_s4, 16  ;;  %p1670_p10 = scmp.lt.s32.totalorder %s1664_s4, %s2148_s8 }
  0x55   : > { %1249 = vmatmul.msk.bf16.vlgmr.msra.gmra.mxu1 %vm516_vm0, %v536_v27  ;;  %p1666_p1 = scmp.ne.s32.totalorder %s1664_s4, %s1665_s6  ;;  %p1671_p11 = scmp.lt.s32.totalorder %s1669_s15, %s1665_s6 }
  0x57   : > { %p1667_p3 = pnand %p1666_p1, %p1924_p2  ;;  %p1672_p12 = por %p1671_p11, %p1670_p10 }
  0x59   : > { %p1668_p5 = pneg %p1667_p3 }
  0x5b   : > { %p1673_p13 = pnand %p1672_p12, %p1668_p5 }
  0xd0   : > { %v529_v6 = vpop.f32.mrf.mxu0 }
  0xd1   : > { %v533_v7 = vpack.c.bf16 %v529_v6, %v529_v6 }
  0xd2   : > { %v565_v40 = vpop.f32.mrf.mxu1 }
  0xd3   : > { %535 = vst.msk [vmem:[#allocation2] sm:$0xf] %vm534_vm1, %v533_v7  ;;  %v569_v41 = vpack.c.bf16 %v565_v40, %v565_v40 }
  0xd5   : > { %570 = vst.msk [vmem:[#allocation3] sm:$0xf] %vm534_vm1, %v569_v41 }
  0xd6   : > { %v601_v8 = vpop.f32.mrf.mxu2 }
  0xd7   : > { %v605_v9 = vpack.c.bf16 %v601_v8, %v601_v8 }
  0xd8   : > { %v531_v10 = vpop.f32.mrf.mxu0 }
  0xd9   : > { %v680_v11 = vunpack.c.l.b16 %v605_v9 }
  0xda   : > { %v606_v12 = vld [vmem:[#allocation2] sm:$0xf]  ;;  %v567_v42 = vpop.f32.mrf.mxu1 }
  0xdb   : > { %v766_v13 = vld [vmem:[#allocation2] sm:$0xf]  ;;  %v681_v15 = vpack.c.b16 %v680_v11, %v680_v11  ;;  %v613_v16 = vsel %vm608_vm2, %v606_v12, 0 }
  0xdc   : > { %v677_v14 = vld [vmem:[#allocation2] sm:$0xf]  ;;  %v771_v17 = vunpack.c.l.b16 %v766_v13  ;;  %622 = vmatpush.bf16.xpose.msra.mxu3 %v613_v16  ;;  %v607_v43 = vld [vmem:[#allocation3] sm:$0xf] }
  0xdd   : > { %v685_v18 = vunpack.c.l.b16 %v677_v14  ;;  %768 = vrot.lane.b32.xlu2 %v681_v15, %s1783_s11  ;;  %v852_v22 = vld [vmem:[#allocation2] sm:$0xf]  ;;  %v660_v44 = vsel %vm658_vm3, %v607_v43, 0  ;;  %v678_v6 = vld [vmem:[#allocation3] sm:$0xf] }
  0xde   : > { %v772_v19 = vpack.c.b16 %v771_v17, %v771_v17  ;;  %v603_v21 = vpop.f32.mrf.mxu2  ;;  %v857_v23 = vunpack.c.l.b16 %v852_v22  ;;  %669 = vmatpush.bf16.msrb.mxu0 %v660_v44  ;;  %v736_v11 = vunpack.c.l.b16 %v678_v6  ;;  %v853_v26 = vld [vmem:[#allocation3] sm:$0xf] }
  0xdf   : > { %v686_v20 = vpack.c.b16 %v685_v18, %v685_v18  ;;  %v908_v27 = vunpack.c.l.b16 %v853_v26  ;;  %v1292_v26 = vld [vmem:[#allocation16] sm:$0xff] }
  0xe0   : > { %773 = vrot.lane.b32.xlu1 %v772_v19, %s1783_s11  ;;  %v858_v24 = vpack.c.b16 %v857_v23, %v857_v23  ;;  %v737_v19 = vpack.c.b16 %v736_v11, %v736_v11 }
  0xe1   : > { %687 = vrot.lane.b32.xlu0 %v686_v20, %s1784_s17 }
  0xe3   : > { %1259 = vmatmul.msk.bf16.vlgmr.msra.gmra.mxu3 %vm608_vm2, %v605_v9 }
  0xe5   : > { %854 = vrot.lane.b32.xlu2 %v681_v15, %s1785_s16 }
  0xe8   : > { %859 = vrot.lane.b32.xlu1 %v858_v24, %s1785_s16 }
  0xe9   : > { %682 = vrot.lane.b32.xlu0 %v681_v15, %s1784_s17 }
 0x137   : > { %v769_v32 = vpop.permute.xlu2 %768 }
 0x13f   : > { %v855_v38 = vpop.permute.xlu2 %854 }
 0x152   : > { %v774_v28 = vpop.permute.xlu1 %773 }
 0x153   : > { %v688_v29 = vpop.permute.xlu0 %687  ;;  %v779_v31 = vsel %vm608_vm2, %v774_v28, 0  ;;  %v909_v28 = vpack.c.b16 %v908_v27, %v908_v27 }
 0x154   : > { %v693_v30 = vsel %vm608_vm2, %v688_v29, 0  ;;  %788 = vmatpush.bf16.xpose.msrb.mxu3 %v779_v31  ;;  %v767_v29 = vld [vmem:[#allocation3] sm:$0xf] }
 0x155   : > { %702 = vmatpush.bf16.xpose.msrb.mxu1 %v693_v30  ;;  %v822_v30 = vunpack.c.l.b16 %v767_v29 }
 0x157   : > { %v823_v31 = vpack.c.b16 %v822_v30, %v822_v30 }
 0x15a   : > { %v860_v33 = vpop.permute.xlu1 %859 }
 0x15b   : > { %v683_v34 = vpop.permute.xlu0 %682  ;;  %v865_v35 = vsel %vm608_vm2, %v860_v33, 0  ;;  %1264 = vmatmul.msk.bf16.vlgmr.msrb.gmra.mxu3 %vm608_vm2, %v769_v32 }
 0x15c   : > { %1261 = vmatmul.msk.bf16.vlgmr.msrb.gmra.mxu1 %vm608_vm2, %v683_v34 }
 0x15d   : > { %874 = vmatpush.bf16.xpose.msra.mxu1 %v865_v35 }
 0x166   : > { %v624_v36 = vpop.f32.mrf.mxu3 }
 0x167   : > { %v628_v37 = vsel %vm608_vm2, %v624_v36, -inf }
 0x168   : > { %629 = vmax.xlane.f32.xlu1 %v628_v37 }
 0x16c   : > { %1267 = vmatmul.msk.bf16.vlgmr.msra.gmra.mxu1 %vm608_vm2, %v855_v38 }
 0x16e   : > { %v626_v39 = vpop.f32.mrf.mxu3 }
 0x1d9   : > { %v704_v45 = vpop.f32.mrf.mxu1 }
 0x1da   : > { %v708_v46 = vsel %vm608_vm2, %v704_v45, -inf }
 0x1db   : > { %709 = vmax.xlane.f32.xlu0 %v708_v46  ;;  %v630_v47 = vpop.xlane.xlu1 %629 }
 0x1dc   : > { %v631_v48 = vsub.f32 %v624_v36, %v630_v47 }
 0x1de   : > { %v790_v49 = vpop.f32.mrf.mxu3  ;;  %v632_v50 = vmul.f32 1.442695, %v631_v48 }
 0x1df   : > { %v794_v58 = vsel %vm608_vm2, %v790_v49, -inf }
 0x1e0   : > { %1423 = vpow2.f32 %v632_v50 }
 0x1e1   : > { %v706_v51 = vpop.f32.mrf.mxu1 }
 0x1e6   : > { %v792_v52 = vpop.f32.mrf.mxu3  ;;  %v1424_v53 = vpop.eup %1423 }
 0x1e7   : > { %v634_v55 = vsel %vm608_vm2, %v1424_v53, 0.0 }
 0x1e8   : > { %635 = vadd.xlane.f32.xlu1 %v634_v55 }
 0x1e9   : > { %v876_v54 = vpop.f32.mrf.mxu1 }
 0x1ea   : > { %v880_v56 = vsel %vm608_vm2, %v876_v54, -inf }
 0x1eb   : > { %881 = vmax.xlane.f32.xlu2 %v880_v56 }
 0x1f1   : > { %v878_v57 = vpop.f32.mrf.mxu1 }
 0x1f3   : > { %795 = vmax.xlane.f32.xlu2 %v794_v58 }
 0x24e   : > { %v710_v59 = vpop.xlane.xlu0 %709 }
 0x24f   : > { %v711_v60 = vsub.f32 %v704_v45, %v710_v59 }
 0x251   : > { %v712_v61 = vmul.f32 1.442695, %v711_v60 }
 0x253   : > { %1425 = vpow2.f32 %v712_v61 }
 0x259   : > { %v2046_v62 = vpop.eup %1425 }
 0x25a   : > { %v714_v63 = vsel %vm608_vm2, %v2046_v62, 0.0 }
 0x25b   : > { %715 = vadd.xlane.f32.xlu0 %v714_v63  ;;  %v636_v0 = vpop.xlane.xlu1 %635 }
 0x25c   : > { %1427 = vrcp.f32 %v636_v0  ;;  %v648_v10 = vand.u32 2147483648, %v636_v0  ;;  %v646_v14 = vand.u32 2147483647, %v636_v0  ;;  %vm642_vm5 = vweird.f32 %v636_v0 }
 0x25e   : > { %v882_v1 = vpop.xlane.xlu2 %881  ;;  %v649_v18 = vor.u32 1.1754944e-38, %v648_v10  ;;  %vm647_vm7 = vcmp.eq.f32.partialorder %v646_v14, 8.507059e+37 }
 0x25f   : > { %v883_v2 = vsub.f32 %v876_v54, %v882_v1 }
 0x261   : > { %v884_v3 = vmul.f32 1.442695, %v883_v2 }
 0x262   : > { %v1428_v4 = vpop.eup %1427 }
 0x263   : > { %1429 = vpow2.f32 %v884_v3  ;;  %v638_v5 = vmul.f32 %v1428_v4, %v636_v0  ;;  %vm643_vm4 = vweird.f32 %v1428_v4 }
 0x264   : > { %vm644_vm6 = vmor %vm642_vm5, %vm643_vm4 }
 0x265   : > { %v639_v8 = vsub.f32 1.0, %v638_v5 }
 0x266   : > { %v796_v7 = vpop.xlane.xlu2 %795 }
 0x267   : > { %v797_v9 = vsub.f32 %v790_v49, %v796_v7  ;;  %v640_v13 = vmul.f32 %v1428_v4, %v639_v8 }
 0x269   : > { %v2050_v12 = vpop.eup %1429  ;;  %v798_v15 = vmul.f32 1.442695, %v797_v9  ;;  %v641_v17 = vadd.f32 %v1428_v4, %v640_v13 }
 0x26a   : > { %v886_v16 = vsel %vm608_vm2, %v2050_v12, 0.0 }
 0x26b   : > { %1431 = vpow2.f32 %v798_v15  ;;  %887 = vadd.xlane.f32.xlu2 %v886_v16  ;;  %v645_v20 = vsel %vm644_vm6, %v1428_v4, %v641_v17 }
 0x26c   : > { %v650_v21 = vsel %vm647_vm7, %v649_v18, %v645_v20 }
 0x26d   : > { %v651_v22 = vmul.f32 %v1424_v53, %v650_v21 }
 0x26f   : > { %738 = vrot.lane.b32.xlu0 %v737_v19, %s1784_s17  ;;  %v652_v24 = vpack.c.bf16 %v651_v22, %v651_v22 }
 0x271   : > { %v2056_v23 = vpop.eup %1431  ;;  %1260 = vmatmul.msk.bf16.vlgmr.msrb.gmra.mxu0 %vm608_vm2, %v652_v24  ;;  %654 = vst.msk [vmem:[%s2061_s24] sm:$0xf] %vm653_vm8, %v652_v24 }
 0x272   : > { %v800_v25 = vsel %vm608_vm2, %v2056_v23, 0.0 }
 0x273   : > { %801 = vadd.xlane.f32.xlu1 %v800_v25  ;;  %v1293_v25 = vld [vmem:[#allocation16 + $0x8] sm:$0xff] }
 0x274   : > { %964 = vmatpush.bf16.msra.mxu3 %v1293_v25 }
 0x278   : > { %965 = vmatpush.bf16.msra.mxu3 %v1292_v26 }
 0x283   : > { %910 = vrot.lane.b32.xlu2 %v909_v28, %s1785_s16 }
 0x28c   : > { %824 = vrot.lane.b32.xlu1 %v823_v31, %s1783_s11 }
 0x2ce   : > { %v716_v32 = vpop.xlane.xlu0 %715 }
 0x2cf   : > { %1433 = vrcp.f32 %v716_v32  ;;  %v728_v37 = vand.u32 2147483648, %v716_v32  ;;  %v726_v38 = vand.u32 2147483647, %v716_v32  ;;  %vm722_vm10 = vweird.f32 %v716_v32 }
 0x2d1   : > { %v729_v40 = vor.u32 1.1754944e-38, %v728_v37  ;;  %vm727_vm12 = vcmp.eq.f32.partialorder %v726_v38, 8.507059e+37 }
 0x2d5   : > { %v1434_v33 = vpop.eup %1433 }
 0x2d6   : > { %v718_v34 = vmul.f32 %v1434_v33, %v716_v32  ;;  %vm723_vm9 = vweird.f32 %v1434_v33 }
 0x2d7   : > { %vm724_vm11 = vmor %vm722_vm10, %vm723_vm9 }
 0x2d8   : > { %v719_v35 = vsub.f32 1.0, %v718_v34 }
 0x2da   : > { %v720_v36 = vmul.f32 %v1434_v33, %v719_v35 }
 0x2dc   : > { %v721_v39 = vadd.f32 %v1434_v33, %v720_v36 }
 0x2de   : > { %v888_v41 = vpop.xlane.xlu2 %887  ;;  %v725_v42 = vsel %vm724_vm11, %v1434_v33, %v721_v39 }
 0x2df   : > { %1435 = vrcp.f32 %v888_v41  ;;  %v730_v43 = vsel %vm727_vm12, %v729_v40, %v725_v42  ;;  %v900_v54 = vand.u32 2147483648, %v888_v41  ;;  %v898_v56 = vand.u32 2147483647, %v888_v41 }
 0x2e0   : > { %v731_v45 = vmul.f32 %v2046_v62, %v730_v43  ;;  %vm894_vm14 = vweird.f32 %v888_v41 }
 0x2e1   : > { %v739_v44 = vpop.permute.xlu0 %738  ;;  %v901_v59 = vor.u32 1.1754944e-38, %v900_v54  ;;  %vm899_vm1 = vcmp.eq.f32.partialorder %v898_v56, 8.507059e+37 }
 0x2e2   : > { %v744_v46 = vsel %vm658_vm3, %v739_v44, 0  ;;  %v732_v47 = vpack.c.bf16 %v731_v45, %v731_v45 }
 0x2e3   : > { %753 = vmatpush.bf16.msrb.mxu2 %v744_v46 }
 0x2e4   : > { %1262 = vst.msk [vmem:[%s2061_s24 + $0x4] sm:$0xf] %vm653_vm8, %v732_v47 }
 0x2e5   : > { %v1436_v48 = vpop.eup %1435 }
 0x2e6   : > { %v890_v49 = vmul.f32 %v1436_v48, %v888_v41  ;;  %1263 = vmatmul.msk.bf16.vlgmr.msrb.gmra.mxu2 %vm608_vm2, %v732_v47  ;;  %v802_v50 = vpop.xlane.xlu1 %801  ;;  %v911_v51 = vpop.permute.xlu2 %910  ;;  %vm895_vm13 = vweird.f32 %v1436_v48 }
 0x2e7   : > { %1437 = vrcp.f32 %v802_v50  ;;  %v916_v53 = vsel %vm658_vm3, %v911_v51, 0  ;;  %vm896_vm15 = vmor %vm894_vm14, %vm895_vm13  ;;  %v814_v2 = vand.u32 2147483648, %v802_v50  ;;  %v812_v5 = vand.u32 2147483647, %v802_v50 }
 0x2e8   : > { %v891_v52 = vsub.f32 1.0, %v890_v49  ;;  %925 = vmatpush.bf16.msra.mxu2 %v916_v53  ;;  %vm808_vm5 = vweird.f32 %v802_v50 }
 0x2e9   : > { %v815_v8 = vor.u32 1.1754944e-38, %v814_v2  ;;  %vm813_vm7 = vcmp.eq.f32.partialorder %v812_v5, 8.507059e+37 }
 0x2ea   : > { %v892_v55 = vmul.f32 %v1436_v48, %v891_v52 }
 0x2ec   : > { %v893_v57 = vadd.f32 %v1436_v48, %v892_v55 }
 0x2ed   : > { %v1438_v58 = vpop.eup %1437 }
 0x2ee   : > { %v897_v60 = vsel %vm896_vm15, %v1436_v48, %v893_v57  ;;  %v804_v61 = vmul.f32 %v1438_v58, %v802_v50  ;;  %v671_v1 = vpop.f32.mrf.mxu0  ;;  %vm809_vm4 = vweird.f32 %v1438_v58 }
 0x2ef   : > { %v902_v62 = vsel %vm899_vm1, %v901_v59, %v897_v60  ;;  %v675_v3 = vpack.c.bf16 %v671_v1, %v671_v1  ;;  %vm810_vm6 = vmor %vm808_vm5, %vm809_vm4 }
 0x2f0   : > { %v903_v63 = vmul.f32 %v2050_v12, %v902_v62  ;;  %v805_v0 = vsub.f32 1.0, %v804_v61 }
 0x2f1   : > { %676 = vst.msk [vmem:[#allocation4] sm:$0xf] %vm653_vm8, %v675_v3 }
 0x2f2   : > { %v806_v4 = vmul.f32 %v1438_v58, %v805_v0  ;;  %v904_v6 = vpack.c.bf16 %v903_v63, %v903_v63 }
 0x2f4   : > { %v807_v7 = vadd.f32 %v1438_v58, %v806_v4  ;;  %1268 = vst.msk [vmem:[%s2061_s24 + $0xc] sm:$0xf] %vm653_vm8, %v904_v6 }
 0x2f6   : > { %v811_v9 = vsel %vm810_vm6, %v1438_v58, %v807_v7  ;;  %1269 = vmatmul.msk.bf16.vlgmr.msra.gmra.mxu2 %vm608_vm2, %v904_v6  ;;  %v673_v12 = vpop.f32.mrf.mxu0 }
 0x2f7   : > { %v816_v10 = vsel %vm813_vm7, %v815_v8, %v811_v9 }
 0x2f8   : > { %v817_v11 = vmul.f32 %v2056_v23, %v816_v10 }
 0x2fa   : > { %v818_v13 = vpack.c.bf16 %v817_v11, %v817_v11 }
 0x2fc   : > { %1265 = vst.msk [vmem:[%s2061_s24 + $0x8] sm:$0xf] %vm653_vm8, %v818_v13  ;;  %vm936_vm8 = vcmask 257216  }
 0x2fe   : > { %v825_v14 = vpop.permute.xlu1 %824 }
 0x2ff   : > { %v830_v15 = vsel %vm658_vm3, %v825_v14, 0  ;;  %vm850_vm3 = vcmask 191616  }
 0x300   : > { %839 = vmatpush.bf16.msra.mxu0 %v830_v15 }
 0x303   : > { %1266 = vmatmul.msk.bf16.vlgmr.msra.gmra.mxu0 %vm608_vm2, %v818_v13  ;;  %vm764_vm2 = vcmask 126016  }
 0x369   : > { %v755_v16 = vpop.f32.mrf.mxu2 }
 0x36a   : > { %v759_v17 = vpack.c.bf16 %v755_v16, %v755_v16 }
 0x36c   : > { %761 = vrot.lane.b32.xlu0 %v759_v17, %s1786_s9 }
 0x371   : > { %v757_v18 = vpop.f32.mrf.mxu2 }
 0x379   : > { %v927_v19 = vpop.f32.mrf.mxu2 }
 0x37a   : > { %v931_v20 = vpack.c.bf16 %v927_v19, %v927_v19 }
 0x37c   : > { %933 = vrot.lane.b32.xlu2 %v931_v20, %s1787_s10 }
 0x380   : > { %v841_v21 = vpop.f32.mrf.mxu0 }
 0x381   : > { %v845_v22 = vpack.c.bf16 %v841_v21, %v841_v21  ;;  %v929_v23 = vpop.f32.mrf.mxu2 }
 0x383   : > { %847 = vrot.lane.b32.xlu0 %v845_v22, %s1788_s1 }
 0x388   : > { %v843_v24 = vpop.f32.mrf.mxu0 }
 0x3d6   : > { %v934_v29 = vpop.permute.xlu2 %933 }
 0x3de   : > { %v762_v27 = vpop.permute.xlu0 %761 }
 0x3df   : > { %765 = vst.msk [vmem:[#allocation4] sm:$0xf] %vm764_vm2, %v762_v27 }
 0x3f5   : > { %v848_v28 = vpop.permute.xlu0 %847 }
 0x3f6   : > { %851 = vst.msk [vmem:[#allocation4] sm:$0xf] %vm850_vm3, %v848_v28 }
 0x3f7   : > { %937 = vst.msk [vmem:[#allocation4] sm:$0xf] %vm936_vm8, %v934_v29 }
 0x3fe   : > { %v938_v30 = vld [vmem:[#allocation4] sm:$0xf] }
 0x3ff   : > { %1278 = vmatmul.msk.bf16.vlgmr.msra.gmra.mxu3 %vm516_vm0, %v938_v30 }
 0x400   : > { %1676 = shalt.err (!%p1673_p13)
}
 0x401   : > { %s1789_s11 = smov 64   ;;  %s1790_s17 = smov 4  }
 0x402   : > { %1318 = dma.vmem_to_hbm [thread:$0]  (%p1924_p2), %s1007_s12, 256, %s1009_s14, %s978_s18, %s1789_s11, %s1789_s11, %s1790_s17  }
 0x403   : > { %s1281_s16 = sshll.u32 %s1767_s30, 3  ;;  %s1230_s5 = sshll.u32 %s1993_s3, 3 }
 0x404   : > { %s989_s10 = scalar_lea.hbm %s2147_s7, %s1281_s16  ;;  %s486_s1 = scalar_lea.vmem [#allocation17], %s1230_s5 }
 0x405   : > { %s991_s13 = sshll.u32 %s486_s1, 4  ;;  %s993_s20 = sshll.u32 %s989_s10, 4  ;;  %s992_s13 = int_to_ptr.vmem [resolvable:$true] %s991_s13  ;;  %s994_s20 = int_to_ptr.hbm [resolvable:$true] %s993_s20 }
 0x406   : > { %s973_s23 = scalar_lea.sflag [#allocation7], %s1993_s3  ;;  %s1691_s26 = sshra.s32 %s994_s20, 4  ;;  %s1692_s26 = int_to_ptr.hbm [resolvable:$true] %s1691_s26 }
 0x407   : > { %s1693_s4 = scalar_lea.hbm %s1692_s26, 8  ;;  %s1697_s14 = scalar_lea.hbm %s2147_s7, 16 }
 0x408   : > { %p1694_p0 = scmp.ne.s32.totalorder %s1692_s26, %s1693_s4  ;;  %p1698_p8 = scmp.lt.s32.totalorder %s1692_s26, %s2147_s7 }
 0x409   : > { %p1699_p1 = scmp.lt.s32.totalorder %s1697_s14, %s1693_s4 }
 0x40a   : > { %p1695_p4 = pnand %p1694_p0, %p1924_p2 }
 0x40b   : > { %p1700_p3 = por %p1699_p1, %p1698_p8 }
 0x40c   : > { %p1696_p9 = pneg %p1695_p4 }
 0x40e   : > { %p1701_p5 = pnand %p1700_p3, %p1696_p9 }
 0x482   : > { %v967_v31 = vpop.f32.mrf.mxu3 }
 0x483   : > { %971 = vst.msk [vmem:[%s486_s1] sm:$0xff] %vm516_vm0, %v967_v31 }
 0x484   : > { %1704 = shalt.err (!%p1701_p5)
}
 0x485   : > { %1317 = dma.vmem_to_hbm [thread:$0]  (%p1924_p2), %s992_s13, 128, %s994_s20, %s973_s23  }
 0x48a   : > { %v969_v32 = vpop.f32.mrf.mxu3 }
 0x48b PF: > { %s2187_s25 = sld [smem:[#allocation27_spill]]  ;;  %s1023_s0 = sand.u32 1, %s1755_s27  }
 0x48c   : > { %p1345_p10 = pnand %p1215_p6, %p1931_p7  ;;  %s1024_s15 = scalar_lea.sflag [#allocation7], %s1023_s0 }
 0x48e   : > { %p1346_p11 = pneg %p1345_p10 }
 0x490   : > { %1746 = dma.done.wait (%p1346_p11), %s1024_s15, 128  }
 0x491   : > { %1748 = vsyncadd (%p1346_p11), %s1024_s15, 4294967168  ;;  %s1034_s22 = scalar_lea.sflag [#allocation19], %s1023_s0 }
 0x492   : > { %1750 = dma.done.wait (%p1346_p11), %s1034_s22, 256  }
 0x493   : > { %1752 = vsyncadd (%p1346_p11), %s1034_s22, 4294967040  ;;  %s33_s10 = sadd.s32 1, %s2187_s25   ;;  %s2188_s19 = sld [smem:[#allocation29_spill]] }
 0x494   : > { %p30_p12 = scmp.ge.s32.totalorder %s33_s10, 4   ;;  %s2189_s30 = sld [smem:[#allocation26_spill]] }
 0x495   : > { %s2190_s9 = sld [smem:[#allocation28_spill]]  ;;  %s2191_s27 = smov %s1759_s28 }
 0x496   : > { %s2192_s28 = smov %s1763_s29  ;;  %32 = sbr.rel (!%p30_p12) target bundleno = 19 (0x13), region = 157 }
 0x499   : > { %s2193_s29 = smov %s2188_s19 }
 0x49b   :  { %1040 = vsyncpa [#allocation6], 1 }
 0x49c   :  { %1042 = vsyncpa [#allocation6 + $0x1], 1 }
 0x49d   :  { %1043 = vsyncpa [#allocation9], 1 }
 0x49e   :  { %1045 = vsyncpa [#allocation9 + $0x1], 1 }
 0x49f   :  { %1046 = vsyncpa [#allocation12], 1 }
 0x4a0   :  { %1047 = vsyncpa [#allocation15], 1 }
 0x4a1   :  { %1048 = vsyncpa [#allocation7], 1 }
 0x4a2   :  { %1050 = vsyncpa [#allocation7 + $0x1], 1 }
 0x4a3   :  { %1051 = vsyncpa [#allocation19], 1 }
 0x4a4   :  { %1053 = vsyncpa [#allocation19 + $0x1], 1 }

</bundles_post_ra>
